<compile_context>
chip_gen: v5e
topology: v5e:2x2
jax: 0.10.0
libtpu: 0.0.40
codegen_flags: <defaults>
</compile_context>

<pallas_src>
import jax
import jax.numpy as jnp
from jax import lax
from jax.experimental import pallas as pl
from jax.experimental.pallas import tpu as pltpu

BN_EPS = 1e-5
MAX_TILE_P = 65536     # hard cap on pixels per grid step (per image)
MAX_NB = 8             # hard cap on batch images blocked per grid step (static unroll)


def _round_up(x, m):
    return ((x + m - 1) // m) * m


def _cdiv(a, b):
    return -(-a // b)


def _vmem_budget_bytes():
    """Generation-aware scoped-VMEM budget (v5e/v6e: 128 MiB physical, v7x: 64 MiB)."""
    try:
        phys = int(pltpu.get_tpu_info().vmem_capacity_bytes)
    except Exception:
        phys = 64 << 20  # conservative fallback (v7x per-core physical VMEM)
    return int(min((phys * 3) // 4, 96 << 20))


def _choose_blocking(N, C_in, C_out, HW, itemsize, vmem_budget):
    """Pick (Nb, tile_p, HW_padded).

    Pass 2 is the VMEM-binding pass: double-buffered x-block (Nb*C_in*tile_p) plus
    double-buffered out-block (Nb*C_out*tile_p, f32).  Keep those under ~half the
    budget so the compiler has scratch headroom."""
    per_pixel = 2 * (itemsize * C_in + 4 * C_out)     # bytes per (image, pixel), dbl-buffered
    budget = max(vmem_budget // 2, 2 * 128 * per_pixel)
    max_pix = max(128, min(budget // per_pixel, MAX_TILE_P))
    hw128 = _round_up(HW, 128)

    if hw128 <= max_pix:
        # Whole spatial extent fits in one tile: block batch images per step (small-HW regime).
        nb_cap = max(1, min(max_pix // hw128, MAX_NB))
        Nb = 1
        for d in range(min(N, nb_cap), 0, -1):
            if N % d == 0:
                Nb = d
                break
        tile_p, T = hw128, 1
    else:
        Nb = 1
        cap = (max_pix // 128) * 128
        T = _cdiv(HW, cap)
        tile_p = _round_up(_cdiv(HW, T), 128)         # balanced tiles; pad < 128*T pixels
    return Nb, tile_p, T * tile_p


# ---------------------------------------------------------------------------
# Pass 1: per-tile x statistics (sum_x and Gram x x^T) -- pure HBM stream of x.
# ---------------------------------------------------------------------------
def _stats_kernel(x_ref, stats_ref):
    # x_ref:     (Nb, C_in, TILE_P)   pixels in lanes
    # stats_ref: (C_in, C_in + 1)     col 0 = sum_x, cols 1.. = Gram
    nb = x_ref.shape[0]
    s = None
    g = None
    for b in range(nb):                                  # small static unroll (Nb <= MAX_NB)
        xb = x_ref[b]                                    # (C_in, TILE_P)
        gb = lax.dot_general(xb, xb, (((1,), (1,)), ((), ())),
                             preferred_element_type=jnp.float32)     # (C_in, C_in)
        sb = jnp.sum(xb.astype(jnp.float32), axis=1, keepdims=True)  # (C_in, 1)
        g = gb if g is None else g + gb
        s = sb if s is None else s + sb
    stats_ref[:, 0:1] = s
    stats_ref[:, 1:] = g


# ---------------------------------------------------------------------------
# Pass 2: fused deconv + folded BN + ReLU:  out = max(W_eff @ x + shift, 0)
# ---------------------------------------------------------------------------
def _deconv_bn_relu_kernel(x_ref, weff_ref, shift_ref, o_ref):
    # x_ref:     (Nb, C_in, TILE_P)
    # weff_ref:  (C_out, C_in)    = scale[:,None] * W^T
    # shift_ref: (C_out, 1)       = beta - scale * (W^T mean_x)
    # o_ref:     (Nb, C_out, TILE_P)  -- lane-dense NCHW output
    w = weff_ref[...]
    shift = shift_ref[...]
    nb = x_ref.shape[0]
    for b in range(nb):
        z = jnp.dot(w, x_ref[b], preferred_element_type=jnp.float32)   # (C_out, TILE_P)
        o_ref[b] = jnp.maximum(z + shift, 0.0).astype(o_ref.dtype)


def deconv_bn_relu(x_nchw, weight, bias, gamma, beta, *, input_dtype=jnp.float32):
    """x_nchw: (N, C_in, H, W)
       weight: (C_in, C_out, 1, 1)  (ConvTranspose2d weight layout)
       bias:   (C_out,)  -- unused: exactly cancelled by train-mode BN mean subtraction
       gamma/beta: (C_out,)
       input_dtype: set jnp.bfloat16 to halve x HBM traffic (x is read twice); f32 default."""
    del bias  # cancelled by BatchNorm train-mode mean subtraction
    N, C_in, H, W = x_nchw.shape
    C_out = weight.shape[1]
    HW = H * W

    itemsize = jnp.dtype(input_dtype).itemsize
    vmem_budget = _vmem_budget_bytes()
    Nb, tile_p, HW_p = _choose_blocking(N, C_in, C_out, HW, itemsize, vmem_budget)
    NG, T = N // Nb, HW_p // tile_p

    # Glue (cheap): NCHW viewed as (N, C_in, H*W); zero-pad pixel axis to a 128-aligned tile.
    x3 = x_nchw.reshape(N, C_in, HW).astype(input_dtype)
    if HW_p != HW:
        x3 = jnp.pad(x3, ((0, 0), (0, 0), (0, HW_p - HW)))
    w2d = weight.reshape(C_in, C_out).astype(jnp.float32)        # (C_in, C_out), tiny

    x_spec = pl.BlockSpec((Nb, C_in, tile_p), lambda n, p: (n, 0, p))
    cparams = pltpu.CompilerParams(
        dimension_semantics=("parallel", "parallel"),
        vmem_limit_bytes=vmem_budget,
    )

    # ---- Pass 1: per-tile x statistics (parallel grid, megacore-friendly) ----
    stats = pl.pallas_call(
        _stats_kernel,
        out_shape=jax.ShapeDtypeStruct((NG, T, C_in, C_in + 1), jnp.float32),
        grid_spec=pltpu.PrefetchScalarGridSpec(
            num_scalar_prefetch=0,
            grid=(NG, T),
            in_specs=[x_spec],
            out_specs=pl.BlockSpec(
                (pl.Squeezed(), pl.Squeezed(), C_in, C_in + 1),
                lambda n, p: (n, p, 0, 0)),
        ),
        compiler_params=cparams,
    )(x3)

    # ---- Tiny cross-tile reduction + BN folding (per-channel scalars, plain JAX) ----
    count = float(N * HW)                              # true count; zero pad contributes 0
    stats = jnp.sum(stats, axis=(0, 1))                # (C_in, C_in+1)
    sum_x = stats[:, 0]                                # (C_in,)
    gram = stats[:, 1:]                                # (C_in, C_in)
    mean_x = sum_x / count
    cov_x = gram / count - jnp.outer(mean_x, mean_x)   # biased covariance of x
    mean_y = w2d.T @ mean_x                            # (C_out,)  (conv bias cancels)
    var_y = jnp.maximum(jnp.einsum("ic,ij,jc->c", w2d, cov_x, w2d), 0.0)
    scale = gamma.astype(jnp.float32) * lax.rsqrt(var_y + BN_EPS)
    w_eff = (w2d.T * scale[:, None]).astype(input_dtype)           # (C_out, C_in)
    shift = (beta.astype(jnp.float32) - mean_y * scale).reshape(C_out, 1)

    # ---- Pass 2: fused deconv(+folded BN) + ReLU, lane-dense NCHW output ----
    out3 = pl.pallas_call(
        _deconv_bn_relu_kernel,
        out_shape=jax.ShapeDtypeStruct((N, C_out, HW_p), jnp.float32),
        grid_spec=pltpu.PrefetchScalarGridSpec(
            num_scalar_prefetch=0,
            grid=(NG, T),
            in_specs=[
                x_spec,
                pl.BlockSpec((C_out, C_in), lambda n, p: (0, 0)),
                pl.BlockSpec((C_out, 1), lambda n, p: (0, 0)),
            ],
            out_specs=pl.BlockSpec((Nb, C_out, tile_p), lambda n, p: (n, 0, p)),
        ),
        compiler_params=cparams,
    )(x3, w_eff, shift)

    if HW_p != HW:
        out3 = out3[:, :, :HW]
    return out3.reshape(N, C_out, H, W)


def reference(x_nchw, weight, bias, gamma, beta):
    """Pure-JAX reference mirroring PyTorch semantics (train-mode BN)."""
    w2d = weight.reshape(weight.shape[0], weight.shape[1])
    y = jnp.einsum("nchw,co->nohw", x_nchw, w2d) + bias[None, :, None, None]
    mean = jnp.mean(y, axis=(0, 2, 3), keepdims=True)
    var = jnp.mean((y - mean) ** 2, axis=(0, 2, 3), keepdims=True)
    yhat = (y - mean) * lax.rsqrt(var + BN_EPS)
    yhat = yhat * gamma[None, :, None, None] + beta[None, :, None, None]
    return jnp.maximum(yhat, 0.0)


if __name__ == "__main__":
    key = jax.random.PRNGKey(0)
    kx, kw, kb = jax.random.split(key, 3)

    N, C_in, C_out, H, W = 2, 4, 8, 16, 16
    x = jax.random.normal(kx, (N, C_in, H, W), dtype=jnp.float32)

    # ConvTranspose2d(kernel_size=1): weight (C_in, C_out, 1, 1), bias (C_out,)
    fan = float(C_in)
    weight = jax.random.uniform(kw, (C_in, C_out, 1, 1), jnp.float32,
                                minval=-1.0, maxval=1.0) / jnp.sqrt(fan)
    bias = jax.random.uniform(kb, (C_out,), jnp.float32,
                              minval=-1.0, maxval=1.0) / jnp.sqrt(fan)
    gamma = jnp.ones((C_out,), jnp.float32)   # BatchNorm2d default weight
    beta = jnp.zeros((C_out,), jnp.float32)   # BatchNorm2d default bias

    out = deconv_bn_relu(x, weight, bias, gamma, beta)
    out = jax.block_until_ready(out)

    ref = reference(x, weight, bias, gamma, beta)
    assert out.shape == (N, C_out, H, W)
    assert jnp.allclose(out, ref, atol=1e-4, rtol=1e-4), "mismatch vs reference"

    print("KERNEL_OK")
</pallas_src>

<mosaic_0001>
module attributes {stable_mosaic.version = 11 : i64} {
  func.func @_stats_kernel(%arg0: i32, %arg1: i32, %arg2: memref<2x4x256xf32, #tpu.memory_space<vmem>>, %arg3: memref<1x1x4x5xf32, #tpu.memory_space<vmem>>) attributes {dimension_semantics = [#tpu.dimension_semantics<parallel>, #tpu.dimension_semantics<parallel>], iteration_bounds = array<i64: 1, 1>, scalar_prefetch = 0 : i64, scratch_operands = 0 : i64, tpu.core_type = #tpu.core_type<tc>, window_params = [{transform_indices = @transform_0, window_bounds = array<i64: 2, 4, 256>}, {transform_indices = @transform_1, window_bounds = array<i64: 1, 1, 4, 5>}]} {
    %c0 = arith.constant 0 : index
    %c0_0 = arith.constant 0 : index
    %c0_1 = arith.constant 0 : index
    %0 = vector.load %arg2[%c0, %c0_0, %c0_1] : memref<2x4x256xf32, #tpu.memory_space<vmem>>, vector<1x4x256xf32>
    %1 = vector.shape_cast %0 : vector<1x4x256xf32> to vector<4x256xf32>
    %cst = arith.constant dense<0.000000e+00> : vector<4x4xf32>
    %2 = tpu.matmul %1, %1, %cst {dimension_numbers = #tpu.dot_dimension_numbers<[1], [1], [0], [0], [0, 0, 1, 0], [], []>} : vector<4x256xf32>, vector<4x256xf32>, vector<4x4xf32> -> vector<4x4xf32>
    %cst_2 = arith.constant dense<0.000000e+00> : vector<4xf32>
    %3 = vector.multi_reduction <add>, %1, %cst_2 [1] : vector<4x256xf32> to vector<4xf32>
    %4 = vector.shape_cast %3 : vector<4xf32> to vector<4x1xf32>
    %c1 = arith.constant 1 : index
    %c0_3 = arith.constant 0 : index
    %c0_4 = arith.constant 0 : index
    %5 = vector.load %arg2[%c1, %c0_3, %c0_4] : memref<2x4x256xf32, #tpu.memory_space<vmem>>, vector<1x4x256xf32>
    %6 = vector.shape_cast %5 : vector<1x4x256xf32> to vector<4x256xf32>
    %cst_5 = arith.constant dense<0.000000e+00> : vector<4x4xf32>
    %7 = tpu.matmul %6, %6, %cst_5 {dimension_numbers = #tpu.dot_dimension_numbers<[1], [1], [0], [0], [0, 0, 1, 0], [], []>} : vector<4x256xf32>, vector<4x256xf32>, vector<4x4xf32> -> vector<4x4xf32>
    %cst_6 = arith.constant dense<0.000000e+00> : vector<4xf32>
    %8 = vector.multi_reduction <add>, %6, %cst_6 [1] : vector<4x256xf32> to vector<4xf32>
    %9 = vector.shape_cast %8 : vector<4xf32> to vector<4x1xf32>
    %10 = arith.addf %2, %7 : vector<4x4xf32>
    %11 = arith.addf %4, %9 : vector<4x1xf32>
    %c0_7 = arith.constant 0 : index
    %c0_8 = arith.constant 0 : index
    %c0_9 = arith.constant 0 : index
    %c0_10 = arith.constant 0 : index
    %12 = vector.load %arg3[%c0_7, %c0_8, %c0_9, %c0_10] : memref<1x1x4x5xf32, #tpu.memory_space<vmem>>, vector<1x1x4x1xf32>
    %13 = vector.shape_cast %12 : vector<1x1x4x1xf32> to vector<4x1xf32>
    %14 = vector.shape_cast %11 : vector<4x1xf32> to vector<1x1x4x1xf32>
    tpu.vector_store %arg3[%c0_7, %c0_8, %c0_9, %c0_10], %14 {strides = array<i32>} : memref<1x1x4x5xf32, #tpu.memory_space<vmem>>, vector<1x1x4x1xf32>,
    %c0_11 = arith.constant 0 : index
    %c0_12 = arith.constant 0 : index
    %c0_13 = arith.constant 0 : index
    %c1_14 = arith.constant 1 : index
    %15 = vector.load %arg3[%c0_11, %c0_12, %c0_13, %c1_14] : memref<1x1x4x5xf32, #tpu.memory_space<vmem>>, vector<1x1x4x4xf32>
    %16 = vector.shape_cast %15 : vector<1x1x4x4xf32> to vector<4x4xf32>
    %17 = vector.shape_cast %10 : vector<4x4xf32> to vector<1x1x4x4xf32>
    tpu.vector_store %arg3[%c0_11, %c0_12, %c0_13, %c1_14], %17 {strides = array<i32>} : memref<1x1x4x5xf32, #tpu.memory_space<vmem>>, vector<1x1x4x4xf32>,
    return
  }
  func.func @transform_0(%arg0: i32, %arg1: i32) -> (i32, i32, i32) {
    %c0_i32 = arith.constant 0 : i32
    %c0_i32_0 = arith.constant 0 : i32
    return %arg0, %c0_i32, %arg1 : i32, i32, i32
  }
  func.func @transform_1(%arg0: i32, %arg1: i32) -> (i32, i32, i32, i32) {
    %c0_i32 = arith.constant 0 : i32
    %c0_i32_0 = arith.constant 0 : i32
    %c0_i32_1 = arith.constant 0 : i32
    return %arg0, %arg1, %c0_i32, %c0_i32_0 : i32, i32, i32, i32
  }
}

</mosaic_0001>

<bundles_post_ra>
// kernel: tpu_custom_call.1
= control target key start
LH: loop header
LB: loop body
LE: loop exit
PB: predicated region body
PF: predicated region fallthrough
CT: control target
= control target key end

     0   :  { %6 = vsyncpa [#allocation3], 0  ;;  %s259_s0 = inlined_call_operand.hbm [shape: f32[2,4,256], index: 0, kind: input, shape index: {}]   ;;  %s260_s1 = inlined_call_operand.hbm [shape: f32[1,1,4,5], index: 1, kind: output, shape index: {}]  }
   0x1   :  { %7 = vsyncpa [#allocation4], 0  ;;  %s12_s8 = sshll.u32 %s259_s0, 4  ;;  %s234_s9 = smov [#allocation2]   ;;  %s13_s8 = int_to_ptr.hbm [resolvable:$true] %s12_s8 }
   0x2   :  { %s14_s10 = sshll.u32 %s234_s9, 4  ;;  %s235_s11 = smov 128   ;;  %s15_s10 = int_to_ptr.vmem [resolvable:$true] %s14_s10 }
   0x3   :  { %s236_s12 = smov 8  }
   0x4   :  { %20 = dma.hbm_to_vmem [thread:$0]  %s13_s8, 256, %s15_s10, [#allocation3], %s235_s11, %s235_s11, %s236_s12  }
   0x5   :  { %230 = dma.done.wait [#allocation3], 256  }
   0x6   :  { %231 = vsyncadd [#allocation3], 4294967040  ;;  %v25_v0 = vld [vmem:[#allocation2] sm:$0xff]  ;;  %v39_v1 = vld [vmem:[#allocation2 + $0x8] sm:$0xff]  ;;  %vm32_vm0 = vcmask 1043456   ;;  %vm152_vm1 = vcmask 3072  }
   0x7   :  { %27 = vst [vmem:[#allocation1] ss:$2 sm:$0xff] %v25_v0  ;;  %s237_s0 = smov 1   ;;  %s238_s13 = smov [#allocation5]   ;;  %vm158_vm2 = vcmask 35848  }
   0x8   :  { %s165_s14 = sshll.u32 %s238_s13, 4  ;;  %s167_s17 = sshll.u32 %s260_s1, 4  ;;  %s166_s14 = int_to_ptr.vmem [resolvable:$true] %s165_s14  ;;  %s168_s17 = int_to_ptr.hbm [resolvable:$true] %s167_s17 }
   0xe   :  { %v28_v2 = vld.sshfl [vmem:[#allocation1] sm:$0xff pattern:$0x75316420]  ;;  %v29_v3 = vld.sshfl [vmem:[#allocation1 + $0x8] sm:$0xff pattern:$0x75316420] }
   0xf   :  { %41 = vst [vmem:[#allocation1] ss:$2 sm:$0xff] %v39_v1  ;;  %v33_v6 = vsel %vm32_vm0, %v28_v2, 0.0  ;;  %v34_v7 = vsel %vm32_vm0, %v29_v3, 0.0 }
  0x10   :  { %v35_v8 = vadd.f32 %v34_v7, %v33_v6 }
  0x12   :  { %36 = vadd.xlane.f32.xlu0 %v35_v8 }
  0x16   :  { %v42_v4 = vld.sshfl [vmem:[#allocation1] sm:$0xff pattern:$0x75316420]  ;;  %v43_v5 = vld.sshfl [vmem:[#allocation1 + $0x8] sm:$0xff pattern:$0x75316420] }
  0x17   :  { %46 = vst [vmem:[#allocation1] ss:$2 sm:$0xff] %v39_v1 }
  0x1e   :  { %v47_v9 = vld.sshfl [vmem:[#allocation1] sm:$0xff pattern:$0x75316420]  ;;  %v48_v10 = vld.sshfl [vmem:[#allocation1 + $0x8] sm:$0xff pattern:$0x75316420] }
  0x1f   :  { %91 = vst [vmem:[#allocation1] ss:$2 sm:$0xff] %v39_v1  ;;  %66 = vmatpush.xpose.msra.mxu0 %v47_v9  ;;  %86 = vmatpush.xpose.msra.mxu1 %v48_v10 }
  0x22   :  { %67 = vmatmul.f32.vlgmr.msra.gmra.mxu0 %v42_v4  ;;  %87 = vmatmul.f32.vlgmr.msra.gmra.mxu1 %v43_v5 }
  0x26   :  { %v92_v11 = vld.sshfl [vmem:[#allocation1] sm:$0xff pattern:$0x75316420]  ;;  %v93_v12 = vld.sshfl [vmem:[#allocation1 + $0x8] sm:$0xff pattern:$0x75316420] }
  0x27   :  { %101 = vst [vmem:[#allocation1] ss:$2 sm:$0xff] %v25_v0  ;;  %v96_v13 = vsel %vm32_vm0, %v92_v11, 0.0  ;;  %v97_v14 = vsel %vm32_vm0, %v93_v12, 0.0 }
  0x28   :  { %v98_v15 = vadd.f32 %v97_v14, %v96_v13 }
  0x2a   :  { %99 = vadd.xlane.f32.xlu0 %v98_v15 }
  0x2e   :  { %v102_v16 = vld.sshfl [vmem:[#allocation1] sm:$0xff pattern:$0x75316420]  ;;  %v103_v17 = vld.sshfl [vmem:[#allocation1 + $0x8] sm:$0xff pattern:$0x75316420] }
  0x2f   :  { %106 = vst [vmem:[#allocation1] ss:$2 sm:$0xff] %v25_v0 }
  0x36   :  { %v107_v18 = vld.sshfl [vmem:[#allocation1] sm:$0xff pattern:$0x75316420]  ;;  %v108_v19 = vld.sshfl [vmem:[#allocation1 + $0x8] sm:$0xff pattern:$0x75316420] }
  0x37   :  { %126 = vmatpush.xpose.msra.mxu2 %v107_v18  ;;  %146 = vmatpush.xpose.msra.mxu3 %v108_v19 }
  0x3a   :  { %127 = vmatmul.f32.vlgmr.msra.gmra.mxu2 %v102_v16  ;;  %147 = vmatmul.f32.vlgmr.msra.gmra.mxu3 %v103_v17 }
  0x85   :  { %v37_v20 = vpop.xlane.xlu0 %36 }
  0x9d   :  { %v100_v21 = vpop.xlane.xlu0 %99 }
  0x9e   :  { %v151_v22 = vadd.f32 %v100_v21, %v37_v20 }
  0x9f   :  { %v68_v23 = vpop.f32.mrf.mxu0  ;;  %v88_v24 = vpop.f32.mrf.mxu1 }
  0xa0   :  { %153 = vst.msk [vmem:[#allocation5] sm:$0xf] %vm152_vm1, %v151_v22  ;;  %v89_v25 = vadd.f32 %v88_v24, %v68_v23 }
  0xbd   :  { %v128_v26 = vpop.f32.mrf.mxu2  ;;  %v148_v27 = vpop.f32.mrf.mxu3 }
  0xbe   :  { %v129_v28 = vadd.f32 %v128_v26, %v89_v25 }
  0xc0   :  { %v149_v29 = vadd.f32 %v148_v27, %v129_v28 }
  0xc2   :  { %155 = vrot.lane.b32.xlu1 %v149_v29, %s237_s0 }
 0x134   :  { %v156_v30 = vpop.permute.xlu1 %155 }
 0x135   :  { %159 = vst.msk [vmem:[#allocation5] sm:$0xf] %vm158_vm2, %v156_v30 }
 0x136   :  { %170 = dma.vmem_to_hbm [thread:$0]  %s166_s14, 64, %s168_s17, [#allocation4]  }
 0x137   :  { %232 = dma.done.wait [#allocation4], 64  }
 0x138   :  { %233 = vsyncadd [#allocation4], 4294967232 }
 0x139   :  { %175 = vsyncpa [#allocation3], 1 }
 0x13a   :  { %176 = vsyncpa [#allocation4], 1 }

</bundles_post_ra>
